<compile_context>
chip_gen: v7x
topology: tpu7x:2x2x1
jax: 0.10.0
libtpu: 0.0.40
codegen_flags: <defaults>
</compile_context>

<pallas_src>
import numpy as np
import jax
import jax.numpy as jnp
from jax.experimental import pallas as pl
from jax.experimental.pallas import tpu as pltpu


# ----------------------------- parameter setup (glue) -----------------------

def _heaviside(n: int) -> np.ndarray:
    """Frequency-domain Heaviside step, matching the torch module exactly."""
    u = np.zeros((n,), dtype=np.float64)
    if n % 2 == 0:
        u[1:n // 2] = 1.0
        u[n // 2] = 0.5
    else:
        u[1:(n - 1) // 2 + 1] = 1.0
    u[0] = 0.5
    return u


def _hilbert_imag_operator(n: int) -> np.ndarray:
    """Im(M) where analytic = x_real @ M (sequence on the last axis).

    M = W * diag(2u) * W^-1 (W = DFT matrix).  Because u_k + u_{N-k} = 1 for the
    module's Heaviside, Re(M) is exactly the identity, so only Im(M) is needed.
    Built in float64, cast to f32.
    """
    k = np.arange(n)
    W = np.exp(-2j * np.pi * np.outer(k, k) / n)          # forward DFT:  xf = x @ W
    Winv = np.exp(2j * np.pi * np.outer(k, k) / n) / n    # inverse DFT:  a  = xf @ Winv
    M = (W * (2.0 * _heaviside(n))[None, :]) @ Winv
    return np.asarray(M.imag, np.float32)


def _round_up(a: int, b: int) -> int:
    return ((a + b - 1) // b) * b


# ----------------------------- Pallas kernel --------------------------------

def _hilbert_kernel(x_ref, mi_ref, out_ref):
    x = x_ref[...]                                                  # (TM, N) f32
    # Imaginary part of the analytic signal; real part is exactly x.
    im = jnp.dot(x, mi_ref[...], preferred_element_type=jnp.float32)
    out_ref[0] = jnp.arctan2(im, x).astype(out_ref.dtype)           # phase plane
    out_ref[1] = jnp.sqrt(x * x + im * im).astype(out_ref.dtype)    # amplitude plane


def hilbert(x: jax.Array, *, fp16: bool = False, tm_max: int = 512) -> jax.Array:
    """Pallas equivalent of Hilbert.forward (dim=-1)."""
    orig_dtype = x.dtype
    n = x.shape[-1]
    lead = x.shape[:-1]

    # Match torch input handling: complex -> real part; everything -> f32.
    x2 = x
    if jnp.issubdtype(orig_dtype, jnp.complexfloating):
        x2 = jnp.real(x2)
    x2 = x2.astype(jnp.float32).reshape(-1, n)
    r = x2.shape[0]

    # Output dtype (fp16 flag wins; complex input -> f32; float input -> same).
    if fp16:
        out_dtype = jnp.dtype(jnp.float16)
    elif jnp.issubdtype(orig_dtype, jnp.complexfloating):
        out_dtype = jnp.dtype(jnp.float32)
    elif jnp.issubdtype(orig_dtype, jnp.floating) and jnp.dtype(orig_dtype).itemsize <= 4:
        out_dtype = jnp.dtype(orig_dtype)
    else:
        # TODO(synk): torch casts back to integer dtypes here; keep f32.
        out_dtype = jnp.dtype(jnp.float32)

    # Adaptive row tile: big enough to amortise the NxN operator and the
    # ~0.35us per-grid-step overhead, small enough not to over-pad tiny batches.
    tm = min(tm_max, _round_up(r, 8))
    r_pad = _round_up(r, tm)
    if r_pad != r:
        x2 = jnp.pad(x2, ((0, r_pad - r), (0, 0)))        # zero rows -> pha=0, amp=0

    mi = jnp.asarray(_hilbert_imag_operator(n))

    # VMEM budget (double-buffered x / out, operator fetched once but 2 bufs).
    vmem_est = 4 * (2 * tm * n) + 4 * (2 * n * n) + out_dtype.itemsize * (2 * 2 * tm * n)
    vmem_limit = None
    if vmem_est > 30 * 1024 * 1024:
        vmem_limit = int(min(vmem_est * 5 // 4, 100 * 1024 * 1024))

    cost = pl.CostEstimate(
        flops=int(2 * r_pad * n * n + 8 * r_pad * n),
        transcendentals=int(2 * r_pad * n),
        bytes_accessed=int(4 * (r_pad * n + n * n) + out_dtype.itemsize * 2 * r_pad * n),
    )

    out = pl.pallas_call(
        _hilbert_kernel,
        out_shape=jax.ShapeDtypeStruct((2, r_pad, n), out_dtype),
        grid_spec=pltpu.PrefetchScalarGridSpec(
            num_scalar_prefetch=0,
            grid=(r_pad // tm,),
            in_specs=[pl.BlockSpec((tm, n), lambda i: (i, 0)),
                      pl.BlockSpec((n, n), lambda i: (0, 0))],   # constant -> fetched once
            out_specs=pl.BlockSpec((2, tm, n), lambda i: (0, i, 0))),
        compiler_params=pltpu.CompilerParams(
            dimension_semantics=("parallel",),
            vmem_limit_bytes=vmem_limit),
        cost_estimate=cost,
    )(x2, mi)

    out = out[:, :r].reshape(2, *lead, n)
    out = jnp.moveaxis(out, 0, -1)                         # (..., N, 2) = stack([pha, amp], -1)
    return out


# ----------------------------- demo / check ---------------------------------

def _reference(x: jax.Array) -> jax.Array:
    """Pure-JAX reference mirroring the torch forward (fft-based)."""
    n = x.shape[-1]
    xf = jnp.fft.fft(x.astype(jnp.float32), axis=-1)
    u = jnp.asarray(_heaviside(n), dtype=jnp.float32)
    a = jnp.fft.ifft(xf * (2.0 * u), axis=-1)
    pha = jnp.arctan2(a.imag, a.real)
    amp = jnp.abs(a)
    return jnp.stack([pha, amp], axis=-1).astype(x.dtype)


if __name__ == "__main__":
    key = jax.random.PRNGKey(0)

    # (batch, channels, seq) — exercises tm == r (no padding) path.
    x = jax.random.normal(key, (2, 4, 128), dtype=jnp.float32)
    out = jax.block_until_ready(hilbert(x))
    assert out.shape == (2, 4, 128, 2)
    assert out.dtype == jnp.float32
    ref = jax.block_until_ready(_reference(x))
    np.testing.assert_allclose(np.asarray(out), np.asarray(ref), atol=5e-2, rtol=5e-3)

    # Second shape exercises the row-padding path (r = 21 -> padded to 24).
    x2 = jax.random.normal(jax.random.PRNGKey(1), (3, 7, 128), dtype=jnp.float32)
    out2 = jax.block_until_ready(hilbert(x2))
    assert out2.shape == (3, 7, 128, 2)
    ref2 = jax.block_until_ready(_reference(x2))
    np.testing.assert_allclose(np.asarray(out2), np.asarray(ref2), atol=5e-2, rtol=5e-3)

    print("KERNEL_OK")
</pallas_src>

<mosaic_0001>
module attributes {stable_mosaic.version = 11 : i64} {
  func.func @_hilbert_kernel(%arg0: i32, %arg1: memref<8x128xf32, #tpu.memory_space<vmem>>, %arg2: memref<128x128xf32, #tpu.memory_space<vmem>>, %arg3: memref<2x8x128xf32, #tpu.memory_space<vmem>>) attributes {dimension_semantics = [#tpu.dimension_semantics<parallel>], iteration_bounds = array<i64: 1>, scalar_prefetch = 0 : i64, scratch_operands = 0 : i64, tpu.core_type = #tpu.core_type<tc>, window_params = [{transform_indices = @transform_0, window_bounds = array<i64: 8, 128>}, {pipeline_mode = #tpu.pipeline_mode<synchronous>, transform_indices = @transform_1, window_bounds = array<i64: 128, 128>}, {transform_indices = @transform_2, window_bounds = array<i64: 2, 8, 128>}]} {
    %c0 = arith.constant 0 : index
    %c0_0 = arith.constant 0 : index
    %0 = vector.load %arg1[%c0, %c0_0] : memref<8x128xf32, #tpu.memory_space<vmem>>, vector<8x128xf32>
    %c0_1 = arith.constant 0 : index
    %c0_2 = arith.constant 0 : index
    %1 = vector.load %arg2[%c0_1, %c0_2] : memref<128x128xf32, #tpu.memory_space<vmem>>, vector<128x128xf32>
    %cst = arith.constant dense<0.000000e+00> : vector<8x128xf32>
    %2 = tpu.matmul %0, %1, %cst {dimension_numbers = #tpu.dot_dimension_numbers<[1], [0], [0], [1], [0, 0, 1, 1], [], []>} : vector<8x128xf32>, vector<128x128xf32>, vector<8x128xf32> -> vector<8x128xf32>
    %3 = math.atan2 %2, %0 : vector<8x128xf32>
    %c0_3 = arith.constant 0 : index
    %c0_4 = arith.constant 0 : index
    %c0_5 = arith.constant 0 : index
    %4 = vector.load %arg3[%c0_3, %c0_4, %c0_5] : memref<2x8x128xf32, #tpu.memory_space<vmem>>, vector<1x8x128xf32>
    %5 = vector.shape_cast %4 : vector<1x8x128xf32> to vector<8x128xf32>
    %6 = vector.shape_cast %3 : vector<8x128xf32> to vector<1x8x128xf32>
    tpu.vector_store %arg3[%c0_3, %c0_4, %c0_5], %6 {strides = array<i32>} : memref<2x8x128xf32, #tpu.memory_space<vmem>>, vector<1x8x128xf32>,
    %7 = arith.mulf %0, %0 : vector<8x128xf32>
    %8 = arith.mulf %2, %2 : vector<8x128xf32>
    %9 = arith.addf %7, %8 : vector<8x128xf32>
    %10 = math.sqrt %9 : vector<8x128xf32>
    %c1 = arith.constant 1 : index
    %c0_6 = arith.constant 0 : index
    %c0_7 = arith.constant 0 : index
    %11 = vector.load %arg3[%c1, %c0_6, %c0_7] : memref<2x8x128xf32, #tpu.memory_space<vmem>>, vector<1x8x128xf32>
    %12 = vector.shape_cast %11 : vector<1x8x128xf32> to vector<8x128xf32>
    %13 = vector.shape_cast %10 : vector<8x128xf32> to vector<1x8x128xf32>
    tpu.vector_store %arg3[%c1, %c0_6, %c0_7], %13 {strides = array<i32>} : memref<2x8x128xf32, #tpu.memory_space<vmem>>, vector<1x8x128xf32>,
    return
  }
  func.func @transform_0(%arg0: i32) -> (i32, i32) {
    %c0_i32 = arith.constant 0 : i32
    %c0_i32_0 = arith.constant 0 : i32
    return %arg0, %c0_i32 : i32, i32
  }
  func.func @transform_1(%arg0: i32) -> (i32, i32) {
    %c0_i32 = arith.constant 0 : i32
    %c0_i32_0 = arith.constant 0 : i32
    %c0_i32_1 = arith.constant 0 : i32
    return %c0_i32, %c0_i32_0 : i32, i32
  }
  func.func @transform_2(%arg0: i32) -> (i32, i32, i32) {
    %c0_i32 = arith.constant 0 : i32
    %c0_i32_0 = arith.constant 0 : i32
    %c0_i32_1 = arith.constant 0 : i32
    return %c0_i32, %arg0, %c0_i32_0 : i32, i32, i32
  }
}

</mosaic_0001>

<bundles_post_ra>
// kernel: tpu_custom_call.1
= control target key start
LH: loop header
LB: loop body
LE: loop exit
PB: predicated region body
PF: predicated region fallthrough
CT: control target
= control target key end

     0   :  { %7 = vsyncpa [#allocation3], 0  ;;  %s439_s0 = inlined_call_operand.hbm [shape: f32[8,128], index: 0, kind: input, shape index: {}]   ;;  %s440_s1 = inlined_call_operand.hbm [shape: f32[128,128], index: 1, kind: input, shape index: {}]   ;;  %s441_s2 = inlined_call_operand.hbm [shape: f32[2,8,128], index: 2, kind: output, shape index: {}]  }
   0x1   :  { %8 = vsyncpa [#allocation6], 0 }
   0x2   :  { %9 = vsyncpa [#allocation4], 0  ;;  %s364_s9 = smov [#allocation2]   ;;  %s365_s11 = smov [#allocation5]  }
   0x3   :  { %s16_s10 = sshll.u32 %s364_s9, 4  ;;  %s25_s12 = sshll.u32 %s365_s11, 4  ;;  %s17_s10 = int_to_ptr.vmem [resolvable:$true] %s16_s10  ;;  %s388_s12 = int_to_ptr.vmem [resolvable:$true] %s25_s12 }
   0x4   :  { %s292_s15 = scalar_lea.hbm %s439_s0, 128 }
   0x5   :  { %p293_p0 = scmp.ne.s32.totalorder %s439_s0, %s292_s15  ;;  %p296_p1 = scmp.lt.u32.totalorder %s292_s15, %s439_s0 }
   0x7   :  { %p298_p2 = pnand %p296_p1, %p293_p0 }
   0x9   :  { %301 = shalt.err (!%p298_p2)
}
   0xa   :  { %s302_s20 = scalar_lea.vmem %s17_s10, 128  ;;  %p307_p4 = scmp.lt.s32.totalorder %s17_s10, %s17_s10 }
   0xb   :  { %p303_p3 = scmp.ne.s32.totalorder %s17_s10, %s302_s20  ;;  %p308_p5 = scmp.lt.s32.totalorder %s302_s20, %s302_s20 }
   0xd   :  { %p309_p6 = por %p308_p5, %p307_p4 }
   0xf   :  { %p310_p7 = pnand %p309_p6, %p303_p3 }
  0x11   :  { %313 = shalt.err (!%p310_p7)
}
  0x12   :  { %19 = dma.hbm_to_vmem [thread:$0]  %s439_s0, 128, %s17_s10, [#allocation3]  }
  0x13   :  { %s314_s25 = scalar_lea.hbm %s440_s1, 2048 }
  0x14   :  { %p315_p8 = scmp.ne.s32.totalorder %s440_s1, %s314_s25  ;;  %p318_p9 = scmp.lt.u32.totalorder %s314_s25, %s440_s1 }
  0x16   :  { %p320_p10 = pnand %p318_p9, %p315_p8 }
  0x18   :  { %323 = shalt.err (!%p320_p10)
}
  0x19   :  { %s324_s30 = scalar_lea.vmem %s388_s12, 2048  ;;  %p329_p12 = scmp.lt.s32.totalorder %s388_s12, %s388_s12 }
  0x1a   :  { %p325_p11 = scmp.ne.s32.totalorder %s388_s12, %s324_s30  ;;  %p330_p13 = scmp.lt.s32.totalorder %s324_s30, %s324_s30 }
  0x1c   :  { %p331_p0 = por %p330_p13, %p329_p12 }
  0x1e   :  { %p332_p1 = pnand %p331_p0, %p325_p11 }
  0x20   :  { %335 = shalt.err (!%p332_p1)
}
  0x21   :  { %s366_s0 = smov 128   ;;  %s367_s3 = smov 8  }
  0x22   :  { %31 = dma.hbm_to_vmem [thread:$0]  %s440_s1, 2048, %s388_s12, [#allocation6], %s366_s0, %s366_s0, %s367_s3  }
  0x23   :  { %358 = dma.done.wait [#allocation3], 128  }
  0x24   :  { %359 = vsyncadd [#allocation3], 4294967168 }
  0x25   :  { %360 = dma.done.wait [#allocation6], 2048  }
  0x26   :  { %361 = vsyncadd [#allocation6], 4294965248  ;;  %v368_v0 = vmov 0.0|0.0   ;;  %vm369_vm0 = vmmov 0   ;;  %v370_v1 = vmov 0.0   ;;  %v39_v2 = vld [vmem:[#allocation5] sm:$0xff] }
  0x27   :  { %255 = vmatprep.subr.bf16.mxu0 %v368_v0  ;;  %252 = vmatprep.mubr.msk.f32.mxu0 %vm369_vm0, %v370_v1  ;;  %v40_v3 = vld [vmem:[#allocation5 + $0x8] sm:$0xff]  ;;  %v41_v4 = vld [vmem:[#allocation5 + $0x10] sm:$0xff]  ;;  %v42_v6 = vld [vmem:[#allocation5 + $0x18] sm:$0xff]  ;;  %s372_s1 = smov [#allocation7]  }
  0x28   :  { %v256_v5 = vpack.c.bf16 %v40_v3, %v39_v2  ;;  %v259_v7 = vpack.c.bf16 %v42_v6, %v41_v4  ;;  %v43_v8 = vld [vmem:[#allocation5 + $0x20] sm:$0xff]  ;;  %v44_v9 = vld [vmem:[#allocation5 + $0x28] sm:$0xff]  ;;  %v45_v11 = vld [vmem:[#allocation5 + $0x30] sm:$0xff]  ;;  %v371_v3 = vmov 0.7853982   ;;  %s190_s6 = sshll.u32 %s372_s1, 4  ;;  %s191_s6 = int_to_ptr.vmem [resolvable:$true] %s190_s6 }
  0x29   :  { %v262_v10 = vpack.c.bf16 %v44_v9, %v43_v8  ;;  %v46_v12 = vld [vmem:[#allocation5 + $0x38] sm:$0xff]  ;;  %v47_v14 = vld [vmem:[#allocation5 + $0x40] sm:$0xff]  ;;  %v48_v15 = vld [vmem:[#allocation5 + $0x48] sm:$0xff]  ;;  %s336_s7 = scalar_lea.vmem %s191_s6, 256  ;;  %p341_p3 = scmp.lt.s32.totalorder %s191_s6, %s191_s6 }
  0x2a   :  { %257 = vmatpush3.bf16.msra.mxu0 %v256_v5  ;;  %v265_v13 = vpack.c.bf16 %v46_v12, %v45_v11  ;;  %v268_v16 = vpack.c.bf16 %v48_v15, %v47_v14  ;;  %v49_v17 = vld [vmem:[#allocation5 + $0x50] sm:$0xff]  ;;  %v50_v18 = vld [vmem:[#allocation5 + $0x58] sm:$0xff]  ;;  %v51_v20 = vld [vmem:[#allocation5 + $0x60] sm:$0xff]  ;;  %p337_p2 = scmp.ne.s32.totalorder %s191_s6, %s336_s7  ;;  %p342_p4 = scmp.lt.s32.totalorder %s336_s7, %s336_s7 }
  0x2b   :  { %258 = vmatprep.subr.bf16.mxu0 %v368_v0  ;;  %v271_v19 = vpack.c.bf16 %v50_v18, %v49_v17  ;;  %v52_v21 = vld [vmem:[#allocation5 + $0x68] sm:$0xff]  ;;  %v53_v23 = vld [vmem:[#allocation5 + $0x70] sm:$0xff]  ;;  %v54_v24 = vld [vmem:[#allocation5 + $0x78] sm:$0xff] }
  0x2c   :  { %v274_v22 = vpack.c.bf16 %v52_v21, %v51_v20  ;;  %v277_v25 = vpack.c.bf16 %v54_v24, %v53_v23  ;;  %v38_v26 = vld [vmem:[#allocation2] sm:$0xff]  ;;  %p343_p5 = por %p342_p4, %p341_p3 }
  0x2d   :  { %v125_v27 = vand.u32 2147483647, %v38_v26  ;;  %v173_v28 = vmul.f32 %v38_v26, %v38_v26  ;;  %vm155_vm3 = vcmp.lt.s32.totalorder %v38_v26, 0  ;;  %vm152_vm5 = vcmp.lt.f32.partialorder %v38_v26, 0.0 }
  0x2e   :  { %260 = vmatpush3.bf16.msra.mxu0 %v259_v7  ;;  %v156_v63 = vsel %vm155_vm3, 3.1415927, %v370_v1  ;;  %vm159_vm6 = vcmp.ne.f32.partialorder %v38_v26, %v38_v26  ;;  %v164_v4 = vsel %vm152_vm5, 2.3561945, %v371_v3  ;;  %p344_p6 = pnand %p343_p5, %p337_p2 }
  0x2f   :  { %261 = vmatprep.subr.bf16.mxu0 %v368_v0  ;;  %vm165_vm8 = vcmp.eq.s32.totalorder %v125_v27, inf }
  0x32   :  { %263 = vmatpush3.bf16.msra.mxu0 %v262_v10 }
  0x33   :  { %264 = vmatprep.subr.bf16.mxu0 %v368_v0 }
  0x36   :  { %266 = vmatpush3.bf16.msra.mxu0 %v265_v13 }
  0x37   :  { %267 = vmatprep.subr.bf16.mxu0 %v368_v0 }
  0x3a   :  { %269 = vmatpush3.bf16.msra.mxu0 %v268_v16 }
  0x3b   :  { %270 = vmatprep.subr.bf16.mxu0 %v368_v0 }
  0x3e   :  { %272 = vmatpush3.bf16.msra.mxu0 %v271_v19 }
  0x3f   :  { %273 = vmatprep.subr.bf16.mxu0 %v368_v0 }
  0x42   :  { %275 = vmatpush3.bf16.msra.mxu0 %v274_v22 }
  0x43   :  { %276 = vmatprep.subr.bf16.mxu0 %v368_v0 }
  0x46   :  { %278 = vmatpush3.bf16.msra.mxu0 %v277_v25 }
  0x49   :  { %253 = vmatmul.mubr.f32.vlgmr.msra.gmra.mrb[0].mxu0 %v38_v26 }
 0x11c   :  { %v121_v29 = vpop.f32.mrb[0].mxu0 }
 0x11d   :  { %v126_v30 = vand.u32 2147483647, %v121_v29  ;;  %v174_v31 = vmul.f32 %v121_v29, %v121_v29  ;;  %v254_v32 = vpop.f32.mrb[1].mxu0  ;;  %vm160_vm7 = vcmp.ne.f32.partialorder %v121_v29, %v121_v29  ;;  %vm157_vm10 = vcmp.eq.f32.partialorder %v121_v29, 0.0 }
 0x11e   :  { %vm161_vm11 = vmor %vm159_vm6, %vm160_vm7  ;;  %v170_v9 = vand.u32 2147483648, %v121_v29 }
 0x11f   :  { %v128_v33 = vmax.f32 %v125_v27, %v126_v30  ;;  %v175_v34 = vadd.f32 %v174_v31, %v173_v28  ;;  %v127_v35 = vmin.f32 %v125_v27, %v126_v30  ;;  %vm149_vm4 = vcmp.gt.f32.partialorder %v126_v30, %v125_v27 }
 0x120   :  { %vm166_vm9 = vcmp.eq.s32.totalorder %v126_v30, inf }
 0x121   :  { %288 = vrcp.f32 %v128_v33  ;;  %vm178_vm1 = vcmp.eq.f32.partialorder %v175_v34, inf  ;;  %v181_v41 = vand.u32 2147483648, %v175_v34  ;;  %vm180_vm2 = vcmp.eq.f32.partialorder %v175_v34, 0.0  ;;  %vm167_vm12 = vmand %vm165_vm8, %vm166_vm9 }
 0x122   :  { %290 = vrsqrt.f32 %v175_v34 }
 0x12b   :  { %v289_v36 = vpop.eup %288 }
 0x12c   :  { %v291_v37 = vpop.eup %290  ;;  %v130_v38 = vmul.f32 %v289_v36, %v127_v35 }
 0x12d   :  { %v177_v39 = vmul.f32 %v291_v37, %v175_v34 }
 0x12e   :  { %v131_v40 = vmul.f32 %v130_v38, %v130_v38 }
 0x12f   :  { %v179_v42 = vsel %vm178_vm1, %v175_v34, %v177_v39 }
 0x130   :  { %v132_v43 = vmul.f32 0.002785687, %v131_v40  ;;  %v182_v44 = vsel %vm180_vm2, %v181_v41, %v179_v42 }
 0x131   :  { %184 = vst [vmem:[#allocation7 + $0x8] sm:$0xff] %v182_v44 }
 0x132   :  { %v133_v45 = vadd.f32 -0.015866, %v132_v43 }
 0x134   :  { %v134_v46 = vmul.f32 %v133_v45, %v131_v40 }
 0x136   :  { %v135_v47 = vadd.f32 0.04247222, %v134_v46 }
 0x138   :  { %v136_v48 = vmul.f32 %v135_v47, %v131_v40 }
 0x13a   :  { %v137_v49 = vadd.f32 -0.074975304, %v136_v48 }
 0x13c   :  { %v138_v50 = vmul.f32 %v137_v49, %v131_v40 }
 0x13e   :  { %v139_v51 = vadd.f32 0.1064488, %v138_v50 }
 0x140   :  { %v140_v52 = vmul.f32 %v139_v51, %v131_v40 }
 0x142   :  { %v141_v53 = vadd.f32 -0.14207031, %v140_v52 }
 0x144   :  { %v142_v54 = vmul.f32 %v141_v53, %v131_v40 }
 0x146   :  { %v143_v55 = vadd.f32 0.19993454, %v142_v54 }
 0x148   :  { %v144_v56 = vmul.f32 %v143_v55, %v131_v40 }
 0x14a   :  { %v145_v57 = vadd.f32 -0.33333147, %v144_v56 }
 0x14c   :  { %v146_v58 = vmul.f32 %v145_v57, %v131_v40 }
 0x14e   :  { %v147_v59 = vmul.f32 %v146_v58, %v130_v38 }
 0x150   :  { %v148_v60 = vadd.f32 %v147_v59, %v130_v38 }
 0x152   :  { %v150_v61 = vsub.f32 1.5707964, %v148_v60 }
 0x154   :  { %v151_v62 = vsel %vm149_vm4, %v150_v61, %v148_v60 }
 0x155   :  { %v153_v0 = vsub.f32 3.1415927, %v151_v62 }
 0x157   :  { %v154_v2 = vsel %vm152_vm5, %v153_v0, %v151_v62 }
 0x158   :  { %v158_v5 = vsel %vm157_vm10, %v156_v63, %v154_v2 }
 0x159   :  { %v162_v6 = vsel %vm161_vm11, nan, %v158_v5 }
 0x15a   :  { %v168_v7 = vsel %vm167_vm12, %v164_v4, %v162_v6 }
 0x15b   :  { %v169_v8 = vand.u32 2147483647, %v168_v7 }
 0x15d   :  { %v171_v10 = vor.u32 %v170_v9, %v169_v8 }
 0x15f   :  { %172 = vst [vmem:[#allocation7] sm:$0xff] %v171_v10 }
 0x160   :  { %347 = shalt.err (!%p344_p6)
}
 0x161   :  { %s348_s10 = scalar_lea.hbm %s441_s2, 256 }
 0x162   :  { %p349_p7 = scmp.ne.s32.totalorder %s441_s2, %s348_s10  ;;  %p352_p8 = scmp.lt.u32.totalorder %s348_s10, %s441_s2 }
 0x164   :  { %p354_p9 = pnand %p352_p8, %p349_p7 }
 0x166   :  { %357 = shalt.err (!%p354_p9)
}
 0x167   :  { %196 = dma.vmem_to_hbm [thread:$0]  %s191_s6, 256, %s441_s2, [#allocation4], %s366_s0, %s366_s0, %s367_s3  }
 0x168   :  { %362 = dma.done.wait [#allocation4], 256  }
 0x169   :  { %363 = vsyncadd [#allocation4], 4294967040 }
 0x16a   :  { %200 = vsyncpa [#allocation3], 1 }
 0x16b   :  { %201 = vsyncpa [#allocation6], 1 }
 0x16c   :  { %202 = vsyncpa [#allocation4], 1 }

</bundles_post_ra>
